<compile_context>
chip_gen: v5e
topology: v5e:2x2
jax: 0.10.0
libtpu: 0.0.40
codegen_flags: <defaults>
</compile_context>

<pallas_src>
import math

import jax
import jax.numpy as jnp
from jax.experimental import pallas as pl
from jax.experimental.pallas import tpu as pltpu


def _dup_kernel(x_ref, o_ref):
    # x_ref: (N, bm)   o_ref: (N, 2, bm)
    # Read the tile once, store it into both copies (each store is lane-dense).
    x = x_ref[...]
    o_ref[:, 0, :] = x
    o_ref[:, 1, :] = x


def _pick_block(m: int) -> int:
    """Largest lane-aligned (multiple of 128) tile size that divides m."""
    for bm in (4096, 2048, 1024, 512, 256, 128):
        if m % bm == 0:
            return bm
    return m  # small / odd trailing size: single full-width block


def concat_self_dim1(x: jax.Array) -> jax.Array:
    """Pallas equivalent of torch.cat((x, x), dim=1)."""
    assert x.ndim >= 2, "concat along dim 1 requires rank >= 2"
    n = x.shape[0]
    rest = math.prod(x.shape[1:])          # C * H * W * ...
    xf = x.reshape(n, rest)

    bm = _pick_block(rest)
    nmb = rest // bm
    itemsize = jnp.dtype(x.dtype).itemsize

    out = pl.pallas_call(
        _dup_kernel,
        out_shape=jax.ShapeDtypeStruct((n, 2, rest), x.dtype),
        grid=(nmb,),
        in_specs=[pl.BlockSpec((n, bm), lambda j: (0, j))],
        out_specs=pl.BlockSpec((n, 2, bm), lambda j: (0, 0, j)),
        compiler_params=pltpu.CompilerParams(
            dimension_semantics=("parallel",)),
        cost_estimate=pl.CostEstimate(
            flops=0,
            transcendentals=0,
            bytes_accessed=3 * n * rest * itemsize),  # 1x read + 2x write
    )(xf)

    # (N, 2, C*rest) -> (N, 2*C, ...) ; identical memory order to torch.cat dim=1.
    return out.reshape((n, 2 * x.shape[1]) + tuple(x.shape[2:]))


if __name__ == "__main__":
    key = jax.random.PRNGKey(0)
    # Input consistent with the module: NCHW, batch=2, channels=4, spatial=16x16.
    x = jax.random.normal(key, (2, 4, 16, 16), jnp.float32)

    out = concat_self_dim1(x)
    out = jax.block_until_ready(out)

    assert out.shape == (2, 8, 16, 16) and out.dtype == x.dtype
    ref = jnp.concatenate([x, x], axis=1)   # reference for torch.cat((x, x), 1)
    assert bool(jnp.array_equal(out, ref))
    print("KERNEL_OK")
</pallas_src>

<mosaic_0001>
module attributes {stable_mosaic.version = 11 : i64} {
  func.func @_dup_kernel(%arg0: i32, %arg1: memref<2x1024xf32, #tpu.memory_space<vmem>>, %arg2: memref<2x2x1024xf32, #tpu.memory_space<vmem>>) attributes {dimension_semantics = [#tpu.dimension_semantics<parallel>], iteration_bounds = array<i64: 1>, scalar_prefetch = 0 : i64, scratch_operands = 0 : i64, tpu.core_type = #tpu.core_type<tc>, window_params = [{transform_indices = @transform_0, window_bounds = array<i64: 2, 1024>}, {transform_indices = @transform_1, window_bounds = array<i64: 2, 2, 1024>}]} {
    %c0 = arith.constant 0 : index
    %c0_0 = arith.constant 0 : index
    %0 = vector.load %arg1[%c0, %c0_0] : memref<2x1024xf32, #tpu.memory_space<vmem>>, vector<2x1024xf32>
    %c0_1 = arith.constant 0 : index
    %c0_2 = arith.constant 0 : index
    %c0_3 = arith.constant 0 : index
    %1 = vector.load %arg2[%c0_1, %c0_2, %c0_3] : memref<2x2x1024xf32, #tpu.memory_space<vmem>>, vector<2x1x1024xf32>
    %2 = vector.shape_cast %1 : vector<2x1x1024xf32> to vector<2x1024xf32>
    %3 = vector.shape_cast %0 : vector<2x1024xf32> to vector<2x1x1024xf32>
    tpu.vector_store %arg2[%c0_1, %c0_2, %c0_3], %3 {strides = array<i32>} : memref<2x2x1024xf32, #tpu.memory_space<vmem>>, vector<2x1x1024xf32>,
    %c0_4 = arith.constant 0 : index
    %c1 = arith.constant 1 : index
    %c0_5 = arith.constant 0 : index
    %4 = vector.load %arg2[%c0_4, %c1, %c0_5] : memref<2x2x1024xf32, #tpu.memory_space<vmem>>, vector<2x1x1024xf32>
    %5 = vector.shape_cast %4 : vector<2x1x1024xf32> to vector<2x1024xf32>
    %6 = vector.shape_cast %0 : vector<2x1024xf32> to vector<2x1x1024xf32>
    tpu.vector_store %arg2[%c0_4, %c1, %c0_5], %6 {strides = array<i32>} : memref<2x2x1024xf32, #tpu.memory_space<vmem>>, vector<2x1x1024xf32>,
    return
  }
  func.func @transform_0(%arg0: i32) -> (i32, i32) {
    %c0_i32 = arith.constant 0 : i32
    %c0_i32_0 = arith.constant 0 : i32
    return %c0_i32, %arg0 : i32, i32
  }
  func.func @transform_1(%arg0: i32) -> (i32, i32, i32) {
    %c0_i32 = arith.constant 0 : i32
    %c0_i32_0 = arith.constant 0 : i32
    %c0_i32_1 = arith.constant 0 : i32
    return %c0_i32, %c0_i32_0, %arg0 : i32, i32, i32
  }
}

</mosaic_0001>

<bundles_post_ra>
// kernel: tpu_custom_call.1
= control target key start
LH: loop header
LB: loop body
LE: loop exit
PB: predicated region body
PF: predicated region fallthrough
CT: control target
= control target key end

     0   :  { %6 = vsyncpa [#allocation3], 0  ;;  %s181_s0 = inlined_call_operand.hbm [shape: f32[2,1024], index: 0, kind: input, shape index: {}]   ;;  %s182_s1 = inlined_call_operand.hbm [shape: f32[2,2,1024], index: 1, kind: output, shape index: {}]  }
   0x1   :  { %7 = vsyncpa [#allocation4], 0  ;;  %s13_s8 = sshll.u32 %s181_s0, 4  ;;  %s147_s9 = smov [#allocation2]   ;;  %s14_s8 = int_to_ptr.hbm [resolvable:$true] %s13_s8 }
   0x2   :  { %s15_s10 = sshll.u32 %s147_s9, 4  ;;  %s16_s10 = int_to_ptr.vmem [resolvable:$true] %s15_s10 }
   0x3   :  { %18 = dma.hbm_to_vmem [thread:$0]  %s14_s8, 256, %s16_s10, [#allocation3]  }
   0x4   :  { %143 = dma.done.wait [#allocation3], 256  }
   0x5   :  { %144 = vsyncadd [#allocation3], 4294967040  ;;  %vm34_vm0 = vcmask 1040384   ;;  %vm36_vm1 = vcmask 1042434   ;;  %vm38_vm2 = vcmask 1041408   ;;  %vm40_vm3 = vcmask 1044484  }
   0x6   :  { %vm42_vm4 = vcmask 1046534   ;;  %vm44_vm5 = vcmask 1045508   ;;  %vm46_vm6 = vcmask 1043456   ;;  %vm48_vm7 = vcmask 1041409   ;;  %v23_v0 = vld [vmem:[#allocation2] sm:$0xff]  ;;  %v24_v1 = vld [vmem:[#allocation2 + $0x8] sm:$0xff] }
   0x7   :  { %vm50_vm8 = vcmask 1043459   ;;  %vm52_vm9 = vcmask 1042433   ;;  %vm54_vm10 = vcmask 1045509   ;;  %vm56_vm11 = vcmask 1046528   ;;  %s148_s0 = smov [#allocation5]   ;;  %s78_s14 = sshll.u32 %s182_s1, 4  ;;  %s79_s14 = int_to_ptr.hbm [resolvable:$true] %s78_s14 }
   0x8   :  { %vm58_vm12 = vcmask 1046533   ;;  %v27_v2 = vrot.slane %v23_v0, 1  ;;  %v28_v3 = vrot.slane %v23_v0, 2  ;;  %v29_v4 = vrot.slane %v23_v0, 3  ;;  %s76_s11 = sshll.u32 %s148_s0, 4  ;;  %s149_s15 = smov 256   ;;  %s77_s11 = int_to_ptr.vmem [resolvable:$true] %s76_s11 }
   0x9   :  { %v30_v5 = vrot.slane %v24_v1, 4  ;;  %v31_v6 = vrot.slane %v24_v1, 5  ;;  %v32_v7 = vrot.slane %v24_v1, 6  ;;  %v33_v8 = vrot.slane %v24_v1, 7  ;;  %s150_s16 = smov 16  }
   0xa   :  { %vm60_vm13 = vcmask 1044481   ;;  %v35_v9 = vsel %vm34_vm0, %v23_v0, %v27_v2  ;;  %v37_v10 = vsel %vm36_vm1, %v28_v3, %v29_v4  ;;  %v49_v11 = vsel %vm48_vm7, %v23_v0, %v27_v2 }
   0xb   :  { %v51_v12 = vsel %vm50_vm8, %v28_v3, %v29_v4  ;;  %v39_v13 = vsel %vm38_vm2, %v35_v9, %v37_v10  ;;  %v41_v14 = vsel %vm40_vm3, %v30_v5, %v31_v6  ;;  %v43_v15 = vsel %vm42_vm4, %v32_v7, %v33_v8 }
   0xc   :  { %v53_v16 = vsel %vm52_vm9, %v49_v11, %v51_v12  ;;  %v45_v17 = vsel %vm44_vm5, %v41_v14, %v43_v15  ;;  %v55_v18 = vsel %vm54_vm10, %v30_v5, %v31_v6  ;;  %v57_v19 = vsel %vm56_vm11, %v33_v8, %v32_v7 }
   0xd   :  { %v47_v20 = vsel %vm46_vm6, %v39_v13, %v45_v17  ;;  %v59_v21 = vsel %vm58_vm12, %v55_v18, %v57_v19 }
   0xe   :  { %65 = vst [vmem:[#allocation5] ss:$2 sm:$0xff] %v47_v20  ;;  %v61_v22 = vsel %vm60_vm13, %v53_v16, %v59_v21 }
   0xf   :  { %69 = vst [vmem:[#allocation5 + $0x1] ss:$2 sm:$0xff] %v47_v20  ;;  %v62_v23 = vrot.slane %v61_v22, 1 }
  0x11   :  { %67 = vst [vmem:[#allocation5 + $0x10] ss:$2 sm:$0xff] %v62_v23 }
  0x12   :  { %71 = vst [vmem:[#allocation5 + $0x11] ss:$2 sm:$0xff] %v62_v23 }
  0x13   :  { %84 = dma.vmem_to_hbm [thread:$0]  %s77_s11, 512, %s79_s14, [#allocation4], %s149_s15, %s149_s15, %s150_s16  }
  0x14   :  { %145 = dma.done.wait [#allocation4], 512  }
  0x15   :  { %146 = vsyncadd [#allocation4], 4294966784 }
  0x16   :  { %89 = vsyncpa [#allocation3], 1 }
  0x17   :  { %90 = vsyncpa [#allocation4], 1 }

</bundles_post_ra>
